<compile_context>
chip_gen: v7x
topology: tpu7x:2x2x1
jax: 0.10.0
libtpu: 0.0.40
codegen_flags: <defaults>
</compile_context>

<pallas_src>
import jax
import jax.numpy as jnp
import numpy as np
from jax.experimental import pallas as pl
from jax.experimental.pallas import tpu as pltpu

DROPOUT = 0.2          # eval mode -> identity
BN_EPS = 1e-5
TILE_B_MAX = 1024      # per-tile intermediates ~6 MiB at 1024 -> far below the VMEM limit
VMEM_LIMIT = 40 * 1024 * 1024   # above the 16/32 MiB scoped defaults, below v7x's 64 MiB physical


# ----------------------------------------------------------------------------- kernel
def predictor_kernel(
    e_ref, m_ref,
    we_ref, be_ref,              # emb branch : bf16 W(emb_dim, hidden_emb), folded f32 bias
    wm_ref, bm_ref,              # meta branch: f32  W(meta_dim, hidden_meta), folded f32 bias (VPU path)
    w1e_ref, w1m_ref, b1_ref,    # comb layer 1 (W1 split for the concat), folded bias
    w2_ref, b2_ref,              # comb layer 2, folded bias
    w3t_ref, b3_ref,             # final layer: bf16 w3^T (1, h2), f32 bias (1, 1)
    out_ref,                     # (1, tile_b) f32 lane-dense row
):
    f32 = jnp.float32
    bf16 = jnp.bfloat16

    # ---- emb branch: Linear (+ folded BN) -> ReLU   (Dropout = identity in eval) ----
    he = jnp.dot(e_ref[...].astype(bf16), we_ref[...], preferred_element_type=f32)
    he = jnp.maximum(he + be_ref[...], 0.0)

    # ---- meta branch on the VPU: meta_dim is tiny, skip a near-empty MXU pass ----
    mv = m_ref[...]                      # f32 (tile_b, meta_dim)
    wm = wm_ref[...]                     # f32 (meta_dim, hidden_meta)
    meta_dim = wm.shape[0]
    hm = bm_ref[...]                     # (1, hidden_meta), broadcasts up
    for k in range(meta_dim):            # static unroll (meta_dim is a compile-time constant)
        hm = hm + mv[:, k:k + 1] * wm[k:k + 1, :]
    hm = jnp.maximum(hm, 0.0)

    # ---- comb layer 1 on cat([he, hm], 1)  ==  he @ W1_e + hm @ W1_m  (+ folded BN) ----
    # TODO(synk): the K=32 w1m contraction could also be folded into a single 544-wide W1
    # matmul; kept split to avoid an in-kernel lane concat.
    h1 = (jnp.dot(he.astype(bf16), w1e_ref[...], preferred_element_type=f32)
          + jnp.dot(hm.astype(bf16), w1m_ref[...], preferred_element_type=f32))
    h1 = jnp.maximum(h1 + b1_ref[...], 0.0)

    # ---- comb layer 2 ----
    h2 = jnp.dot(h1.astype(bf16), w2_ref[...], preferred_element_type=f32)
    h2 = jnp.maximum(h2 + b2_ref[...], 0.0)

    # ---- final Linear(h2, 1): contract feature dims of w3^T (1,h2) and h2 (tile_b,h2) ----
    # Produces a lane-dense (1, tile_b) row directly (no 128-wide zero padding, no
    # sublane->lane relayout), standard "a @ b.T" MXU pattern.
    out_row = jax.lax.dot_general(
        w3t_ref[...], h2.astype(bf16),
        dimension_numbers=(((1,), (1,)), ((), ())),
        preferred_element_type=f32)
    out_ref[...] = out_row + b3_ref[...]


# ---------------------------------------------------------------------------- wrapper
def _round_up(x, m):
    return ((x + m - 1) // m) * m


@jax.jit
def predictor_forward(e, m, params):
    """e: (B, emb_dim) f32, m: (B, meta_dim) f32, params: output of prepare_params()."""
    (we, be, wm, bm, w1e, w1m, b1, w2, b2, w3t, b3) = params

    B, emb_dim = e.shape
    meta_dim = m.shape[1]
    hidden_emb = we.shape[1]
    hidden_meta = wm.shape[1]
    h1 = w1e.shape[1]
    h2 = w2.shape[1]

    # Batch tile: as large as possible (amortize ~0.35 us/step grid overhead), but keep at
    # least two tiles when B allows so v7x's two TensorCores both get work.
    tile_b = min(TILE_B_MAX, _round_up(B, 8))
    if B >= 16:
        tile_b = min(tile_b, _round_up(pl.cdiv(B, 2), 8))
    num_tiles = pl.cdiv(B, tile_b)        # ragged last tile: garbage rows sliced off below

    def batch_spec(feat):
        return pl.BlockSpec((tile_b, feat), lambda i: (i, 0))

    def const_spec(x):
        zeros = (0,) * x.ndim
        return pl.BlockSpec(x.shape, lambda i: zeros)

    weights = (we, be, wm, bm, w1e, w1m, b1, w2, b2, w3t, b3)
    # Constant-index blocks are not re-DMA'd across grid steps (Mosaic skips unchanged
    # block indices), so the ~0.4 MiB of weights stays VMEM-resident.
    in_specs = ([batch_spec(emb_dim), batch_spec(meta_dim)]
                + [const_spec(x) for x in weights])

    flops = 2 * B * (emb_dim * hidden_emb + meta_dim * hidden_meta
                     + hidden_emb * h1 + hidden_meta * h1 + h1 * h2 + h2)
    bytes_accessed = int(e.size * e.dtype.itemsize + m.size * m.dtype.itemsize
                         + sum(x.size * x.dtype.itemsize for x in weights)
                         + num_tiles * tile_b * 4)
    cost = pl.CostEstimate(flops=flops, transcendentals=0, bytes_accessed=bytes_accessed)

    out = pl.pallas_call(
        predictor_kernel,
        out_shape=jax.ShapeDtypeStruct((num_tiles, tile_b), jnp.float32),
        grid=(num_tiles,),
        in_specs=in_specs,
        out_specs=pl.BlockSpec((1, tile_b), lambda i: (i, 0)),
        compiler_params=pltpu.CompilerParams(
            dimension_semantics=("parallel",),
            vmem_limit_bytes=VMEM_LIMIT),
        cost_estimate=cost,
    )(e, m, *weights)

    return out.reshape(-1)[:B, None]      # (B, 1), matching the PyTorch module


# ----------------------------------------------------------------------- param setup
def init_raw_params(key, emb_dim, meta_dim, hidden_emb, hidden_meta, h1, h2):
    """Raw (unfolded, f32) parameters mimicking the PyTorch module in eval mode."""
    ks = jax.random.split(key, 10)

    def lin(k, fan_in, fan_out):
        k1, k2 = jax.random.split(k)
        w = jax.random.normal(k1, (fan_in, fan_out), jnp.float32) / np.sqrt(fan_in)
        b = jax.random.normal(k2, (fan_out,), jnp.float32) * 0.01
        return w, b

    def bn(k, n):
        k1, k2 = jax.random.split(k)
        gamma = jnp.ones((n,), jnp.float32)
        beta = jnp.zeros((n,), jnp.float32)
        mean = jax.random.normal(k1, (n,), jnp.float32) * 0.1
        var = jax.random.uniform(k2, (n,), jnp.float32, minval=0.5, maxval=1.5)
        return (gamma, beta, mean, var)

    we, be = lin(ks[0], emb_dim, hidden_emb);            bn_e = bn(ks[1], hidden_emb)
    wm, bm = lin(ks[2], meta_dim, hidden_meta);          bn_m = bn(ks[3], hidden_meta)
    w1, b1 = lin(ks[4], hidden_emb + hidden_meta, h1);   bn_1 = bn(ks[5], h1)
    w2, b2 = lin(ks[6], h1, h2);                         bn_2 = bn(ks[7], h2)
    w3, b3 = lin(ks[8], h2, 1)
    return dict(we=we, be=be, bn_e=bn_e, wm=wm, bm=bm, bn_m=bn_m,
                w1=w1, b1=b1, bn_1=bn_1, w2=w2, b2=b2, bn_2=bn_2, w3=w3, b3=b3)


def prepare_params(raw):
    """Fold BN(eval) into the Linear weights/biases, split W1 for the concat, transpose w3,
    and cast matmul weights to bf16.  Called ONCE, outside the per-call jit."""
    bf16 = jnp.bfloat16

    def fold(w, b, bn_params):
        gamma, beta, mean, var = bn_params
        s = gamma / jnp.sqrt(var + BN_EPS)               # per-output-feature scale
        return w * s[None, :], (b * s + beta - mean * s)[None, :]

    we, be = fold(raw['we'], raw['be'], raw['bn_e'])
    wm, bm = fold(raw['wm'], raw['bm'], raw['bn_m'])
    w1, b1 = fold(raw['w1'], raw['b1'], raw['bn_1'])
    w2, b2 = fold(raw['w2'], raw['b2'], raw['bn_2'])

    hidden_emb = raw['we'].shape[1]
    w1e, w1m = w1[:hidden_emb], w1[hidden_emb:]
    w3t = raw['w3'].T                                    # (1, h2) for the lane-dense final dot
    b3 = raw['b3'][None, :]                              # (1, 1)

    return (we.astype(bf16), be,
            wm, bm,                                      # meta weight stays f32 (VPU path)
            w1e.astype(bf16), w1m.astype(bf16), b1,
            w2.astype(bf16), b2,
            w3t.astype(bf16), b3)


# pure-JAX f32 reference with explicit eval-mode BatchNorm (matches PyTorch semantics)
def reference_forward(e, m, raw):
    def bn(x, p):
        gamma, beta, mean, var = p
        return (x - mean) / jnp.sqrt(var + BN_EPS) * gamma + beta

    he = jax.nn.relu(bn(e @ raw['we'] + raw['be'], raw['bn_e']))
    hm = jax.nn.relu(bn(m @ raw['wm'] + raw['bm'], raw['bn_m']))
    x = jnp.concatenate([he, hm], axis=1)
    h1 = jax.nn.relu(bn(x @ raw['w1'] + raw['b1'], raw['bn_1']))
    h2 = jax.nn.relu(bn(h1 @ raw['w2'] + raw['b2'], raw['bn_2']))
    return h2 @ raw['w3'] + raw['b3']


if __name__ == "__main__":
    # small shapes consistent with the module defaults
    B, emb_dim, meta_dim = 8, 32, 8
    hidden_emb, hidden_meta, h1, h2 = 512, 32, 256, 128

    key = jax.random.PRNGKey(0)
    k_e, k_m, k_p = jax.random.split(key, 3)
    e = jax.random.normal(k_e, (B, emb_dim), jnp.float32)
    m = jax.random.normal(k_m, (B, meta_dim), jnp.float32)

    raw = init_raw_params(k_p, emb_dim, meta_dim, hidden_emb, hidden_meta, h1, h2)
    params = prepare_params(raw)          # folded + bf16, done once outside the jit

    out = predictor_forward(e, m, params)
    out = jax.block_until_ready(out)

    ref = reference_forward(e, m, raw)
    # bf16 matmul operands with f32 accumulation across 4 layers -> loose tolerance vs f32
    np.testing.assert_allclose(np.asarray(out), np.asarray(ref), rtol=5e-2, atol=5e-2)

    print("KERNEL_OK")
</pallas_src>

<mosaic_0001>
module attributes {stable_mosaic.version = 11 : i64} {
  func.func @predictor_kernel(%arg0: i32, %arg1: memref<8x32xf32, #tpu.memory_space<vmem>>, %arg2: memref<8x8xf32, #tpu.memory_space<vmem>>, %arg3: memref<32x512xbf16, #tpu.memory_space<vmem>>, %arg4: memref<1x512xf32, #tpu.memory_space<vmem>>, %arg5: memref<8x32xf32, #tpu.memory_space<vmem>>, %arg6: memref<1x32xf32, #tpu.memory_space<vmem>>, %arg7: memref<512x256xbf16, #tpu.memory_space<vmem>>, %arg8: memref<32x256xbf16, #tpu.memory_space<vmem>>, %arg9: memref<1x256xf32, #tpu.memory_space<vmem>>, %arg10: memref<256x128xbf16, #tpu.memory_space<vmem>>, %arg11: memref<1x128xf32, #tpu.memory_space<vmem>>, %arg12: memref<1x128xbf16, #tpu.memory_space<vmem>>, %arg13: memref<1x1xf32, #tpu.memory_space<vmem>>, %arg14: memref<1x8xf32, #tpu.memory_space<vmem>>) attributes {dimension_semantics = [#tpu.dimension_semantics<parallel>], iteration_bounds = array<i64: 1>, scalar_prefetch = 0 : i64, scratch_operands = 0 : i64, tpu.core_type = #tpu.core_type<tc>, window_params = [{transform_indices = @transform_0, window_bounds = array<i64: 8, 32>}, {transform_indices = @transform_1, window_bounds = array<i64: 8, 8>}, {pipeline_mode = #tpu.pipeline_mode<synchronous>, transform_indices = @transform_2, window_bounds = array<i64: 32, 512>}, {pipeline_mode = #tpu.pipeline_mode<synchronous>, transform_indices = @transform_3, window_bounds = array<i64: 1, 512>}, {pipeline_mode = #tpu.pipeline_mode<synchronous>, transform_indices = @transform_4, window_bounds = array<i64: 8, 32>}, {pipeline_mode = #tpu.pipeline_mode<synchronous>, transform_indices = @transform_5, window_bounds = array<i64: 1, 32>}, {pipeline_mode = #tpu.pipeline_mode<synchronous>, transform_indices = @transform_6, window_bounds = array<i64: 512, 256>}, {pipeline_mode = #tpu.pipeline_mode<synchronous>, transform_indices = @transform_7, window_bounds = array<i64: 32, 256>}, {pipeline_mode = #tpu.pipeline_mode<synchronous>, transform_indices = @transform_8, window_bounds = array<i64: 1, 256>}, {pipeline_mode = #tpu.pipeline_mode<synchronous>, transform_indices = @transform_9, window_bounds = array<i64: 256, 128>}, {pipeline_mode = #tpu.pipeline_mode<synchronous>, transform_indices = @transform_10, window_bounds = array<i64: 1, 128>}, {pipeline_mode = #tpu.pipeline_mode<synchronous>, transform_indices = @transform_11, window_bounds = array<i64: 1, 128>}, {pipeline_mode = #tpu.pipeline_mode<synchronous>, transform_indices = @transform_12, window_bounds = array<i64: 1, 1>}, {transform_indices = @transform_13, window_bounds = array<i64: 1, 8>}]} {
    %c0 = arith.constant 0 : index
    %c0_0 = arith.constant 0 : index
    %0 = vector.load %arg1[%c0, %c0_0] : memref<8x32xf32, #tpu.memory_space<vmem>>, vector<8x32xf32>
    %1 = arith.truncf %0 : vector<8x32xf32> to vector<8x32xbf16>
    %c0_1 = arith.constant 0 : index
    %c0_2 = arith.constant 0 : index
    %2 = vector.load %arg3[%c0_1, %c0_2] : memref<32x512xbf16, #tpu.memory_space<vmem>>, vector<32x512xbf16>
    %cst = arith.constant dense<0.000000e+00> : vector<8x512xf32>
    %3 = tpu.matmul %1, %2, %cst {dimension_numbers = #tpu.dot_dimension_numbers<[1], [0], [0], [1], [0, 0, 1, 1], [], []>} : vector<8x32xbf16>, vector<32x512xbf16>, vector<8x512xf32> -> vector<8x512xf32>
    %c0_3 = arith.constant 0 : index
    %c0_4 = arith.constant 0 : index
    %4 = vector.load %arg4[%c0_3, %c0_4] : memref<1x512xf32, #tpu.memory_space<vmem>>, vector<1x512xf32>
    %5 = vector.broadcast %4 : vector<1x512xf32> to vector<8x512xf32>
    %6 = arith.addf %3, %5 : vector<8x512xf32>
    %cst_5 = arith.constant 0.000000e+00 : f32
    %7 = vector.broadcast %cst_5 : f32 to vector<8x512xf32>
    %8 = arith.maximumf %6, %7 : vector<8x512xf32>
    %c0_6 = arith.constant 0 : index
    %c0_7 = arith.constant 0 : index
    %9 = vector.load %arg2[%c0_6, %c0_7] : memref<8x8xf32, #tpu.memory_space<vmem>>, vector<8x8xf32>
    %c0_8 = arith.constant 0 : index
    %c0_9 = arith.constant 0 : index
    %10 = vector.load %arg5[%c0_8, %c0_9] : memref<8x32xf32, #tpu.memory_space<vmem>>, vector<8x32xf32>
    %c0_10 = arith.constant 0 : index
    %c0_11 = arith.constant 0 : index
    %11 = vector.load %arg6[%c0_10, %c0_11] : memref<1x32xf32, #tpu.memory_space<vmem>>, vector<1x32xf32>
    %12 = vector.extract_strided_slice %9 {offsets = [0, 0], sizes = [8, 1], strides = [1, 1]} : vector<8x8xf32> to vector<8x1xf32>
    %13 = vector.extract_strided_slice %10 {offsets = [0, 0], sizes = [1, 32], strides = [1, 1]} : vector<8x32xf32> to vector<1x32xf32>
    %14 = vector.broadcast %12 : vector<8x1xf32> to vector<8x32xf32>
    %15 = vector.broadcast %13 : vector<1x32xf32> to vector<8x32xf32>
    %16 = arith.mulf %14, %15 : vector<8x32xf32>
    %17 = vector.broadcast %11 : vector<1x32xf32> to vector<8x32xf32>
    %18 = arith.addf %17, %16 : vector<8x32xf32>
    %19 = vector.extract_strided_slice %9 {offsets = [0, 1], sizes = [8, 1], strides = [1, 1]} : vector<8x8xf32> to vector<8x1xf32>
    %20 = vector.extract_strided_slice %10 {offsets = [1, 0], sizes = [1, 32], strides = [1, 1]} : vector<8x32xf32> to vector<1x32xf32>
    %21 = vector.broadcast %19 : vector<8x1xf32> to vector<8x32xf32>
    %22 = vector.broadcast %20 : vector<1x32xf32> to vector<8x32xf32>
    %23 = arith.mulf %21, %22 : vector<8x32xf32>
    %24 = arith.addf %18, %23 : vector<8x32xf32>
    %25 = vector.extract_strided_slice %9 {offsets = [0, 2], sizes = [8, 1], strides = [1, 1]} : vector<8x8xf32> to vector<8x1xf32>
    %26 = vector.extract_strided_slice %10 {offsets = [2, 0], sizes = [1, 32], strides = [1, 1]} : vector<8x32xf32> to vector<1x32xf32>
    %27 = vector.broadcast %25 : vector<8x1xf32> to vector<8x32xf32>
    %28 = vector.broadcast %26 : vector<1x32xf32> to vector<8x32xf32>
    %29 = arith.mulf %27, %28 : vector<8x32xf32>
    %30 = arith.addf %24, %29 : vector<8x32xf32>
    %31 = vector.extract_strided_slice %9 {offsets = [0, 3], sizes = [8, 1], strides = [1, 1]} : vector<8x8xf32> to vector<8x1xf32>
    %32 = vector.extract_strided_slice %10 {offsets = [3, 0], sizes = [1, 32], strides = [1, 1]} : vector<8x32xf32> to vector<1x32xf32>
    %33 = vector.broadcast %31 : vector<8x1xf32> to vector<8x32xf32>
    %34 = vector.broadcast %32 : vector<1x32xf32> to vector<8x32xf32>
    %35 = arith.mulf %33, %34 : vector<8x32xf32>
    %36 = arith.addf %30, %35 : vector<8x32xf32>
    %37 = vector.extract_strided_slice %9 {offsets = [0, 4], sizes = [8, 1], strides = [1, 1]} : vector<8x8xf32> to vector<8x1xf32>
    %38 = vector.extract_strided_slice %10 {offsets = [4, 0], sizes = [1, 32], strides = [1, 1]} : vector<8x32xf32> to vector<1x32xf32>
    %39 = vector.broadcast %37 : vector<8x1xf32> to vector<8x32xf32>
    %40 = vector.broadcast %38 : vector<1x32xf32> to vector<8x32xf32>
    %41 = arith.mulf %39, %40 : vector<8x32xf32>
    %42 = arith.addf %36, %41 : vector<8x32xf32>
    %43 = vector.extract_strided_slice %9 {offsets = [0, 5], sizes = [8, 1], strides = [1, 1]} : vector<8x8xf32> to vector<8x1xf32>
    %44 = vector.extract_strided_slice %10 {offsets = [5, 0], sizes = [1, 32], strides = [1, 1]} : vector<8x32xf32> to vector<1x32xf32>
    %45 = vector.broadcast %43 : vector<8x1xf32> to vector<8x32xf32>
    %46 = vector.broadcast %44 : vector<1x32xf32> to vector<8x32xf32>
    %47 = arith.mulf %45, %46 : vector<8x32xf32>
    %48 = arith.addf %42, %47 : vector<8x32xf32>
    %49 = vector.extract_strided_slice %9 {offsets = [0, 6], sizes = [8, 1], strides = [1, 1]} : vector<8x8xf32> to vector<8x1xf32>
    %50 = vector.extract_strided_slice %10 {offsets = [6, 0], sizes = [1, 32], strides = [1, 1]} : vector<8x32xf32> to vector<1x32xf32>
    %51 = vector.broadcast %49 : vector<8x1xf32> to vector<8x32xf32>
    %52 = vector.broadcast %50 : vector<1x32xf32> to vector<8x32xf32>
    %53 = arith.mulf %51, %52 : vector<8x32xf32>
    %54 = arith.addf %48, %53 : vector<8x32xf32>
    %55 = vector.extract_strided_slice %9 {offsets = [0, 7], sizes = [8, 1], strides = [1, 1]} : vector<8x8xf32> to vector<8x1xf32>
    %56 = vector.extract_strided_slice %10 {offsets = [7, 0], sizes = [1, 32], strides = [1, 1]} : vector<8x32xf32> to vector<1x32xf32>
    %57 = vector.broadcast %55 : vector<8x1xf32> to vector<8x32xf32>
    %58 = vector.broadcast %56 : vector<1x32xf32> to vector<8x32xf32>
    %59 = arith.mulf %57, %58 : vector<8x32xf32>
    %60 = arith.addf %54, %59 : vector<8x32xf32>
    %cst_12 = arith.constant 0.000000e+00 : f32
    %61 = vector.broadcast %cst_12 : f32 to vector<8x32xf32>
    %62 = arith.maximumf %60, %61 : vector<8x32xf32>
    %63 = arith.truncf %8 : vector<8x512xf32> to vector<8x512xbf16>
    %c0_13 = arith.constant 0 : index
    %c0_14 = arith.constant 0 : index
    %64 = vector.load %arg7[%c0_13, %c0_14] : memref<512x256xbf16, #tpu.memory_space<vmem>>, vector<512x256xbf16>
    %cst_15 = arith.constant dense<0.000000e+00> : vector<8x256xf32>
    %65 = tpu.matmul %63, %64, %cst_15 {dimension_numbers = #tpu.dot_dimension_numbers<[1], [0], [0], [1], [0, 0, 1, 1], [], []>} : vector<8x512xbf16>, vector<512x256xbf16>, vector<8x256xf32> -> vector<8x256xf32>
    %66 = arith.truncf %62 : vector<8x32xf32> to vector<8x32xbf16>
    %c0_16 = arith.constant 0 : index
    %c0_17 = arith.constant 0 : index
    %67 = vector.load %arg8[%c0_16, %c0_17] : memref<32x256xbf16, #tpu.memory_space<vmem>>, vector<32x256xbf16>
    %cst_18 = arith.constant dense<0.000000e+00> : vector<8x256xf32>
    %68 = tpu.matmul %66, %67, %cst_18 {dimension_numbers = #tpu.dot_dimension_numbers<[1], [0], [0], [1], [0, 0, 1, 1], [], []>} : vector<8x32xbf16>, vector<32x256xbf16>, vector<8x256xf32> -> vector<8x256xf32>
    %69 = arith.addf %65, %68 : vector<8x256xf32>
    %c0_19 = arith.constant 0 : index
    %c0_20 = arith.constant 0 : index
    %70 = vector.load %arg9[%c0_19, %c0_20] : memref<1x256xf32, #tpu.memory_space<vmem>>, vector<1x256xf32>
    %71 = vector.broadcast %70 : vector<1x256xf32> to vector<8x256xf32>
    %72 = arith.addf %69, %71 : vector<8x256xf32>
    %cst_21 = arith.constant 0.000000e+00 : f32
    %73 = vector.broadcast %cst_21 : f32 to vector<8x256xf32>
    %74 = arith.maximumf %72, %73 : vector<8x256xf32>
    %75 = arith.truncf %74 : vector<8x256xf32> to vector<8x256xbf16>
    %c0_22 = arith.constant 0 : index
    %c0_23 = arith.constant 0 : index
    %76 = vector.load %arg10[%c0_22, %c0_23] : memref<256x128xbf16, #tpu.memory_space<vmem>>, vector<256x128xbf16>
    %cst_24 = arith.constant dense<0.000000e+00> : vector<8x128xf32>
    %77 = tpu.matmul %75, %76, %cst_24 {dimension_numbers = #tpu.dot_dimension_numbers<[1], [0], [0], [1], [0, 0, 1, 1], [], []>} : vector<8x256xbf16>, vector<256x128xbf16>, vector<8x128xf32> -> vector<8x128xf32>
    %c0_25 = arith.constant 0 : index
    %c0_26 = arith.constant 0 : index
    %78 = vector.load %arg11[%c0_25, %c0_26] : memref<1x128xf32, #tpu.memory_space<vmem>>, vector<1x128xf32>
    %79 = vector.broadcast %78 : vector<1x128xf32> to vector<8x128xf32>
    %80 = arith.addf %77, %79 : vector<8x128xf32>
    %cst_27 = arith.constant 0.000000e+00 : f32
    %81 = vector.broadcast %cst_27 : f32 to vector<8x128xf32>
    %82 = arith.maximumf %80, %81 : vector<8x128xf32>
    %c0_28 = arith.constant 0 : index
    %c0_29 = arith.constant 0 : index
    %83 = vector.load %arg12[%c0_28, %c0_29] : memref<1x128xbf16, #tpu.memory_space<vmem>>, vector<1x128xbf16>
    %84 = arith.truncf %82 : vector<8x128xf32> to vector<8x128xbf16>
    %cst_30 = arith.constant dense<0.000000e+00> : vector<1x8xf32>
    %85 = tpu.matmul %83, %84, %cst_30 {dimension_numbers = #tpu.dot_dimension_numbers<[1], [1], [0], [0], [0, 0, 1, 0], [], []>} : vector<1x128xbf16>, vector<8x128xbf16>, vector<1x8xf32> -> vector<1x8xf32>
    %c0_31 = arith.constant 0 : index
    %c0_32 = arith.constant 0 : index
    %86 = vector.load %arg13[%c0_31, %c0_32] : memref<1x1xf32, #tpu.memory_space<vmem>>, vector<1x1xf32>
    %87 = vector.broadcast %86 : vector<1x1xf32> to vector<1x8xf32>
    %88 = arith.addf %85, %87 : vector<1x8xf32>
    %c0_33 = arith.constant 0 : index
    %c0_34 = arith.constant 0 : index
    %89 = vector.load %arg14[%c0_33, %c0_34] : memref<1x8xf32, #tpu.memory_space<vmem>>, vector<1x8xf32>
    tpu.vector_store %arg14[%c0_33, %c0_34], %88 {strides = array<i32>} : memref<1x8xf32, #tpu.memory_space<vmem>>, vector<1x8xf32>,
    return
  }
  func.func @transform_0(%arg0: i32) -> (i32, i32) {
    %c0_i32 = arith.constant 0 : i32
    %c0_i32_0 = arith.constant 0 : i32
    return %arg0, %c0_i32 : i32, i32
  }
  func.func @transform_1(%arg0: i32) -> (i32, i32) {
    %c0_i32 = arith.constant 0 : i32
    %c0_i32_0 = arith.constant 0 : i32
    return %arg0, %c0_i32 : i32, i32
  }
  func.func @transform_2(%arg0: i32) -> (i32, i32) {
    %c0_i32 = arith.constant 0 : i32
    %c0_i32_0 = arith.constant 0 : i32
    %c0_i32_1 = arith.constant 0 : i32
    return %c0_i32, %c0_i32_0 : i32, i32
  }
  func.func @transform_3(%arg0: i32) -> (i32, i32) {
    %c0_i32 = arith.constant 0 : i32
    %c0_i32_0 = arith.constant 0 : i32
    %c0_i32_1 = arith.constant 0 : i32
    return %c0_i32, %c0_i32_0 : i32, i32
  }
  func.func @transform_4(%arg0: i32) -> (i32, i32) {
    %c0_i32 = arith.constant 0 : i32
    %c0_i32_0 = arith.constant 0 : i32
    %c0_i32_1 = arith.constant 0 : i32
    return %c0_i32, %c0_i32_0 : i32, i32
  }
  func.func @transform_5(%arg0: i32) -> (i32, i32) {
    %c0_i32 = arith.constant 0 : i32
    %c0_i32_0 = arith.constant 0 : i32
    %c0_i32_1 = arith.constant 0 : i32
    return %c0_i32, %c0_i32_0 : i32, i32
  }
  func.func @transform_6(%arg0: i32) -> (i32, i32) {
    %c0_i32 = arith.constant 0 : i32
    %c0_i32_0 = arith.constant 0 : i32
    %c0_i32_1 = arith.constant 0 : i32
    return %c0_i32, %c0_i32_0 : i32, i32
  }
  func.func @transform_7(%arg0: i32) -> (i32, i32) {
    %c0_i32 = arith.constant 0 : i32
    %c0_i32_0 = arith.constant 0 : i32
    %c0_i32_1 = arith.constant 0 : i32
    return %c0_i32, %c0_i32_0 : i32, i32
  }
  func.func @transform_8(%arg0: i32) -> (i32, i32) {
    %c0_i32 = arith.constant 0 : i32
    %c0_i32_0 = arith.constant 0 : i32
    %c0_i32_1 = arith.constant 0 : i32
    return %c0_i32, %c0_i32_0 : i32, i32
  }
  func.func @transform_9(%arg0: i32) -> (i32, i32) {
    %c0_i32 = arith.constant 0 : i32
    %c0_i32_0 = arith.constant 0 : i32
    %c0_i32_1 = arith.constant 0 : i32
    return %c0_i32, %c0_i32_0 : i32, i32
  }
  func.func @transform_10(%arg0: i32) -> (i32, i32) {
    %c0_i32 = arith.constant 0 : i32
    %c0_i32_0 = arith.constant 0 : i32
    %c0_i32_1 = arith.constant 0 : i32
    return %c0_i32, %c0_i32_0 : i32, i32
  }
  func.func @transform_11(%arg0: i32) -> (i32, i32) {
    %c0_i32 = arith.constant 0 : i32
    %c0_i32_0 = arith.constant 0 : i32
    %c0_i32_1 = arith.constant 0 : i32
    return %c0_i32, %c0_i32_0 : i32, i32
  }
  func.func @transform_12(%arg0: i32) -> (i32, i32) {
    %c0_i32 = arith.constant 0 : i32
    %c0_i32_0 = arith.constant 0 : i32
    %c0_i32_1 = arith.constant 0 : i32
    return %c0_i32, %c0_i32_0 : i32, i32
  }
  func.func @transform_13(%arg0: i32) -> (i32, i32) {
    %c0_i32 = arith.constant 0 : i32
    %c0_i32_0 = arith.constant 0 : i32
    return %arg0, %c0_i32 : i32, i32
  }
}

</mosaic_0001>

<bundles_post_ra>
// kernel: predictor_forward.1
= control target key start
LH: loop header
LB: loop body
LE: loop exit
PB: predicated region body
PF: predicated region fallthrough
CT: control target
= control target key end

     0   :  { %s1894_s0 = inlined_call_operand.hbm [shape: f32[8,32], index: 0, kind: input, shape index: {}]   ;;  %s1895_s1 = inlined_call_operand.hbm [shape: f32[8,8], index: 1, kind: input, shape index: {}]   ;;  %s1896_s2 = inlined_call_operand.hbm [shape: bf16[32,512], index: 2, kind: input, shape index: {}]   ;;  %s1897_s3 = inlined_call_operand.vmem [shape: f32[1,512], index: 3, kind: input, shape index: {}]   ;;  %s1898_s4 = inlined_call_operand.vmem [shape: f32[8,32], index: 4, kind: input, shape index: {}]   ;;  %s1899_s5 = inlined_call_operand.vmem [shape: f32[1,32], index: 5, kind: input, shape index: {}]   ;;  %s1900_s6 = inlined_call_operand.hbm [shape: bf16[512,256], index: 6, kind: input, shape index: {}]   ;;  %s1901_s7 = inlined_call_operand.hbm [shape: bf16[32,256], index: 7, kind: input, shape index: {}]   ;;  %s1902_s8 = inlined_call_operand.vmem [shape: f32[1,256], index: 8, kind: input, shape index: {}]   ;;  %s1903_s9 = inlined_call_operand.hbm [shape: bf16[256,128], index: 9, kind: input, shape index: {}]   ;;  %s1904_s10 = inlined_call_operand.vmem [shape: f32[1,128], index: 10, kind: input, shape index: {}]   ;;  %s1905_s11 = inlined_call_operand.vmem [shape: bf16[1,128], index: 11, kind: input, shape index: {}]   ;;  %s1906_s12 = inlined_call_operand.<no memory space> [shape: f32[1,1], index: 12, kind: input, shape index: {}]   ;;  %s1907_s13 = inlined_call_operand.hbm [shape: f32[1,8], index: 13, kind: output, shape index: {}]  }
   0x1   :  { %v18_v0 = vstv %s1906_s12 }
   0x2   :  { %19 = vst [vmem:[#allocation2] sm:$0x1] %v18_v0 }
   0x3   :  { %20 = vsyncpa [#allocation4], 0 }
   0x4   :  { %21 = vsyncpa [#allocation7], 0 }
   0x5   :  { %22 = vsyncpa [#allocation10], 0 }
   0x6   :  { %23 = vsyncpa [#allocation13], 0 }
   0x7   :  { %24 = vsyncpa [#allocation5], 0  ;;  %s1637_s27 = smov [#allocation6]   ;;  %s1638_s29 = smov [#allocation9]  }
   0x8   :  { %s41_s28 = sshll.u32 %s1637_s27, 4  ;;  %s68_s30 = sshll.u32 %s1638_s29, 4  ;;  %s42_s28 = int_to_ptr.vmem [resolvable:$true] %s41_s28  ;;  %s1733_s30 = int_to_ptr.vmem [resolvable:$true] %s68_s30 }
   0x9   :  { %s1473_s16 = scalar_lea.hbm %s1895_s1, 128 }
   0xa   :  { %p1474_p0 = scmp.ne.s32.totalorder %s1895_s1, %s1473_s16  ;;  %p1477_p1 = scmp.lt.u32.totalorder %s1473_s16, %s1895_s1 }
   0xc   :  { %p1479_p2 = pnand %p1477_p1, %p1474_p0 }
   0xe   :  { %1482 = shalt.err (!%p1479_p2)
}
   0xf   :  { %s1483_s20 = scalar_lea.vmem %s42_s28, 128  ;;  %p1488_p4 = scmp.lt.s32.totalorder %s42_s28, %s42_s28 }
  0x10   :  { %p1484_p3 = scmp.ne.s32.totalorder %s42_s28, %s1483_s20  ;;  %p1489_p5 = scmp.lt.s32.totalorder %s1483_s20, %s1483_s20 }
  0x12   :  { %p1490_p6 = por %p1489_p5, %p1488_p4 }
  0x14   :  { %p1491_p7 = pnand %p1490_p6, %p1484_p3 }
  0x16   :  { %1494 = shalt.err (!%p1491_p7)
}
  0x17   :  { %44 = dma.hbm_to_vmem [thread:$0]  %s1895_s1, 128, %s42_s28, [#allocation7]  }
  0x18   :  { %s1495_s25 = scalar_lea.hbm %s1900_s6, 8192 }
  0x19   :  { %p1496_p8 = scmp.ne.s32.totalorder %s1900_s6, %s1495_s25  ;;  %p1499_p9 = scmp.lt.u32.totalorder %s1495_s25, %s1900_s6 }
  0x1b   :  { %p1501_p10 = pnand %p1499_p9, %p1496_p8 }
  0x1d   :  { %1504 = shalt.err (!%p1501_p10)
}
  0x1e   :  { %s1505_s15 = scalar_lea.vmem %s1733_s30, 8192  ;;  %p1510_p12 = scmp.lt.s32.totalorder %s1733_s30, %s1733_s30 }
  0x1f   :  { %p1506_p11 = scmp.ne.s32.totalorder %s1733_s30, %s1505_s15  ;;  %p1511_p13 = scmp.lt.s32.totalorder %s1505_s15, %s1505_s15 }
  0x21   :  { %p1512_p0 = por %p1511_p13, %p1510_p12 }
  0x23   :  { %p1513_p1 = pnand %p1512_p0, %p1506_p11 }
  0x25   :  { %1516 = shalt.err (!%p1513_p1)
}
  0x26   :  { %s1639_s1 = smov 128   ;;  %s1640_s28 = smov 8  }
  0x27   :  { %74 = dma.hbm_to_vmem [thread:$0]  %s1900_s6, 8192, %s1733_s30, [#allocation10], %s1639_s1, %s1639_s1, %s1640_s28  }
  0x28   :  { %s1641_s18 = smov [#allocation3]   ;;  %s1642_s19 = smov [#allocation8]  }
  0x29   :  { %s31_s12 = sshll.u32 %s1641_s18, 4  ;;  %s50_s20 = sshll.u32 %s1642_s19, 4  ;;  %s32_s12 = int_to_ptr.vmem [resolvable:$true] %s31_s12  ;;  %s1767_s20 = int_to_ptr.vmem [resolvable:$true] %s50_s20 }
  0x2a   :  { %s1517_s23 = scalar_lea.hbm %s1894_s0, 128 }
  0x2b   :  { %p1518_p2 = scmp.ne.s32.totalorder %s1894_s0, %s1517_s23  ;;  %p1521_p3 = scmp.lt.u32.totalorder %s1517_s23, %s1894_s0 }
  0x2d   :  { %p1523_p4 = pnand %p1521_p3, %p1518_p2 }
  0x2f   :  { %1526 = shalt.err (!%p1523_p4)
}
  0x30   :  { %s1527_s6 = scalar_lea.vmem %s32_s12, 128  ;;  %p1532_p6 = scmp.lt.s32.totalorder %s32_s12, %s32_s12 }
  0x31   :  { %p1528_p5 = scmp.ne.s32.totalorder %s32_s12, %s1527_s6  ;;  %p1533_p7 = scmp.lt.s32.totalorder %s1527_s6, %s1527_s6 }
  0x33   :  { %p1534_p8 = por %p1533_p7, %p1532_p6 }
  0x35   :  { %p1535_p9 = pnand %p1534_p8, %p1528_p5 }
  0x37   :  { %1538 = shalt.err (!%p1535_p9)
}
  0x38   :  { %34 = dma.hbm_to_vmem [thread:$0]  %s1894_s0, 128, %s32_s12, [#allocation4]  }
  0x39   :  { %s1539_s16 = scalar_lea.hbm %s1896_s2, 1024 }
  0x3a   :  { %p1540_p10 = scmp.ne.s32.totalorder %s1896_s2, %s1539_s16  ;;  %p1543_p11 = scmp.lt.u32.totalorder %s1539_s16, %s1896_s2 }
  0x3c   :  { %p1545_p12 = pnand %p1543_p11, %p1540_p10 }
  0x3e   :  { %1548 = shalt.err (!%p1545_p12)
}
  0x3f   :  { %s1549_s22 = scalar_lea.vmem %s1767_s20, 1024  ;;  %p1554_p0 = scmp.lt.s32.totalorder %s1767_s20, %s1767_s20 }
  0x40   :  { %p1550_p13 = scmp.ne.s32.totalorder %s1767_s20, %s1549_s22  ;;  %p1555_p1 = scmp.lt.s32.totalorder %s1549_s22, %s1549_s22 }
  0x42   :  { %p1556_p2 = por %p1555_p1, %p1554_p0 }
  0x44   :  { %p1557_p3 = pnand %p1556_p2, %p1550_p13 }
  0x46   :  { %1560 = shalt.err (!%p1557_p3)
}
  0x47   :  { %s1643_s0 = smov 256   ;;  %s1644_s12 = smov 16  }
  0x48   :  { %56 = dma.hbm_to_vmem [thread:$0]  %s1896_s2, 1024, %s1767_s20, [#allocation7], %s1643_s0, %s1643_s0, %s1644_s12  }
  0x49   :  { %s1645_s25 = smov [#allocation11]   ;;  %s1646_s27 = smov [#allocation12]  }
  0x4a   :  { %s80_s26 = sshll.u32 %s1645_s25, 4  ;;  %s94_s6 = sshll.u32 %s1646_s27, 4  ;;  %s81_s26 = int_to_ptr.vmem [resolvable:$true] %s80_s26  ;;  %s1798_s6 = int_to_ptr.vmem [resolvable:$true] %s94_s6 }
  0x4b   :  { %s1561_s14 = scalar_lea.hbm %s1901_s7, 512 }
  0x4c   :  { %p1562_p4 = scmp.ne.s32.totalorder %s1901_s7, %s1561_s14  ;;  %p1565_p5 = scmp.lt.u32.totalorder %s1561_s14, %s1901_s7 }
  0x4e   :  { %p1567_p6 = pnand %p1565_p5, %p1562_p4 }
  0x50   :  { %1570 = shalt.err (!%p1567_p6)
}
  0x51   :  { %s1571_s2 = scalar_lea.vmem %s81_s26, 512  ;;  %p1576_p8 = scmp.lt.s32.totalorder %s81_s26, %s81_s26 }
  0x52   :  { %p1572_p7 = scmp.ne.s32.totalorder %s81_s26, %s1571_s2  ;;  %p1577_p9 = scmp.lt.s32.totalorder %s1571_s2, %s1571_s2 }
  0x54   :  { %p1578_p10 = por %p1577_p9, %p1576_p8 }
  0x56   :  { %p1579_p11 = pnand %p1578_p10, %p1572_p7 }
  0x58   :  { %1582 = shalt.err (!%p1579_p11)
}
  0x59   :  { %86 = dma.hbm_to_vmem [thread:$0]  %s1901_s7, 512, %s81_s26, [#allocation10], %s1639_s1, %s1639_s1, %s1640_s28  }
  0x5a   :  { %s1583_s0 = scalar_lea.hbm %s1903_s9, 2048 }
  0x5b   :  { %p1584_p12 = scmp.ne.s32.totalorder %s1903_s9, %s1583_s0  ;;  %p1587_p13 = scmp.lt.u32.totalorder %s1583_s0, %s1903_s9 }
  0x5d   :  { %p1589_p0 = pnand %p1587_p13, %p1584_p12 }
  0x5f   :  { %1592 = shalt.err (!%p1589_p0)
}
  0x60   :  { %s1593_s27 = scalar_lea.vmem %s1798_s6, 2048  ;;  %p1598_p2 = scmp.lt.s32.totalorder %s1798_s6, %s1798_s6 }
  0x61   :  { %p1594_p1 = scmp.ne.s32.totalorder %s1798_s6, %s1593_s27  ;;  %p1599_p3 = scmp.lt.s32.totalorder %s1593_s27, %s1593_s27 }
  0x63   :  { %p1600_p4 = por %p1599_p3, %p1598_p2 }
  0x65   :  { %p1601_p5 = pnand %p1600_p4, %p1594_p1 }
  0x67   :  { %1604 = shalt.err (!%p1601_p5)
}
  0x68   :  { %s1647_s7 = smov 64   ;;  %s1648_s1 = smov 4  }
  0x69   :  { %100 = dma.hbm_to_vmem [thread:$0]  %s1903_s9, 2048, %s1798_s6, [#allocation13], %s1647_s7, %s1647_s7, %s1648_s1  }
  0x6a   :  { %1627 = dma.done.wait [#allocation4], 128  }
  0x6b   :  { %1628 = vsyncadd [#allocation4], 4294967168 }
  0x6c   :  { %1629 = dma.done.wait [#allocation7], 1152  }
  0x6d   :  { %1630 = vsyncadd [#allocation7], 4294966144 }
  0x6e   :  { %1631 = dma.done.wait [#allocation10], 8704  }
  0x6f   :  { %1632 = vsyncadd [#allocation10], 4294958592 }
  0x70   :  { %1633 = dma.done.wait [#allocation13], 2048  }
  0x71   :  { %1634 = vsyncadd [#allocation13], 4294965248  ;;  %v1649_v1 = vmov 2   ;;  %v1650_v2 = vmov 0   ;;  %v1343_v3 = vld [vmem:[#allocation8 + $0x4] ss:$16 sps:$4 sm:$0xff]   ;;  %v138_v57 = vlaneseq }
  0x72   :  { %1336 = vset.pattern.permute.xlu1 %v1649_v1  ;;  %1334 = vset.pattern.permute.xlu0 %v1650_v2  ;;  %v1345_v4 = vld [vmem:[#allocation8] ss:$16 sps:$4 sm:$0xff]   ;;  %v288_v5 = vld [vmem:[#allocation6] sm:$0xff]  ;;  %v1346_v6 = vld [vmem:[#allocation8 + $0x24] ss:$16 sps:$4 sm:$0xff]   ;;  %v1651_v10 = vmov 3  }
  0x73   :  { %234 = vmatprep.mubr.bf16.mxu0 %v1650_v2  ;;  %202 = vmatprep.subr.bf16.mxu0 %v1343_v3  ;;  %v1348_v7 = vld [vmem:[#allocation8 + $0x20] ss:$16 sps:$4 sm:$0xff]   ;;  %v1351_v9 = vld [vmem:[#allocation8 + $0xc] ss:$16 sps:$4 sm:$0xff]   ;;  %v1349_v12 = vld [vmem:[#allocation8 + $0x8] ss:$16 sps:$4 sm:$0xff]  }
  0x74   :  { %319 = vperm.xlu1 %1336, %v288_v5   ;;  %203 = vmatpush1.bf16.msra.mxu0 %v1345_v4  ;;  %v126_v8 = vld [vmem:[#allocation3] sm:$0xff]  ;;  %v1354_v13 = vld [vmem:[#allocation8 + $0x2c] ss:$16 sps:$4 sm:$0xff]   ;;  %vm198_vm0 = vcmask 261120   ;;  %v1652_v14 = vmov 1   ;;  %v1653_v16 = vmov 4  }
  0x75   :  { %293 = vperm.xlu0 %1334, %v288_v5   ;;  %204 = vmatprep.subr.bf16.mxu0 %v1346_v6  ;;  %v127_v11 = vpack.c.bf16 %v126_v8, %v126_v8  ;;  %v1352_v15 = vld [vmem:[#allocation8 + $0x28] ss:$16 sps:$4 sm:$0xff]   ;;  %v1654_v17 = vmov 5   ;;  %v1655_v18 = vmov 6   ;;  %v1656_v19 = vmov 7   ;;  %v289_v60 = vld [vmem:[%s1898_s4] sm:$0xff] }
  0x76   :  { %v1357_v20 = vld [vmem:[#allocation11 + $0x4] ss:$8 sps:$4 sm:$0xff]   ;;  %v1355_v21 = vld [vmem:[#allocation11] ss:$8 sps:$4 sm:$0xff]   ;;  %v1358_v22 = vld [vmem:[#allocation11 + $0x10] ss:$8 sps:$4 sm:$0xff]  }
  0x77   :  { %v1360_v23 = vld [vmem:[#allocation11 + $0x14] ss:$8 sps:$4 sm:$0xff]   ;;  %v1361_v24 = vld [vmem:[#allocation9 + $0x4] ss:$8 sps:$4 sm:$0xff]   ;;  %v1363_v25 = vld [vmem:[#allocation9] ss:$8 sps:$4 sm:$0xff]  }
  0x78   :  { %1337 = vset.pattern.permute.xlu1 %v1651_v10  ;;  %205 = vmatpush1.bf16.msra.mxu0 %v1348_v7  ;;  %v1364_v26 = vld [vmem:[#allocation9 + $0x14] ss:$8 sps:$4 sm:$0xff]   ;;  %v1371_v27 = vld [vmem:[#allocation9 + $0x104] ss:$8 sps:$4 sm:$0xff]   ;;  %v1366_v28 = vld [vmem:[#allocation9 + $0x10] ss:$8 sps:$4 sm:$0xff]  }
  0x79   :  { %329 = vperm.xlu1 %1337, %v288_v5   ;;  %243 = vmatprep.subr.bf16.mxu0 %v1351_v9  ;;  %v1367_v29 = vld [vmem:[#allocation9 + $0x24] ss:$8 sps:$4 sm:$0xff]   ;;  %v1372_v30 = vld [vmem:[#allocation9 + $0x20] ss:$8 sps:$4 sm:$0xff]   ;;  %v1373_v31 = vld [vmem:[#allocation9 + $0x34] ss:$8 sps:$4 sm:$0xff]  }
  0x7a   :  { %1335 = vset.pattern.permute.xlu0 %v1652_v14  ;;  %836 = vmatprep.subr.bf16.mxu1 %v1361_v24  ;;  %v1378_v32 = vld [vmem:[#allocation9 + $0x30] ss:$8 sps:$4 sm:$0xff]   ;;  %v1379_v33 = vld [vmem:[#allocation9 + $0x44] ss:$8 sps:$4 sm:$0xff]   ;;  %v1384_v34 = vld [vmem:[#allocation9 + $0x40] ss:$8 sps:$4 sm:$0xff]  }
  0x7b   :  { %309 = vperm.xlu0 %1335, %v288_v5   ;;  %1192 = vmatmul.mubr.msk.bf16.vlgmr.msra.gmra.mrb[0].mxu0 %vm198_vm0, %v127_v11  ;;  %v1385_v35 = vld [vmem:[#allocation9 + $0x54] ss:$8 sps:$4 sm:$0xff]   ;;  %v1390_v36 = vld [vmem:[#allocation9 + $0x50] ss:$8 sps:$4 sm:$0xff]   ;;  %v1391_v37 = vld [vmem:[#allocation9 + $0x64] ss:$8 sps:$4 sm:$0xff]  }
  0x7c   :  { %244 = vmatpush1.bf16.msra.mxu0 %v1349_v12  ;;  %275 = vmatprep.mubr.bf16.mxu0 %v1650_v2  ;;  %v1396_v38 = vld [vmem:[#allocation9 + $0x60] ss:$8 sps:$4 sm:$0xff]   ;;  %v1397_v39 = vld [vmem:[#allocation9 + $0x74] ss:$8 sps:$4 sm:$0xff]   ;;  %v1402_v40 = vld [vmem:[#allocation9 + $0x70] ss:$8 sps:$4 sm:$0xff]  }
  0x7d   :  { %1338 = vset.pattern.permute.xlu1 %v1653_v16  ;;  %245 = vmatprep.subr.bf16.mxu0 %v1354_v13  ;;  %v1403_v41 = vld [vmem:[#allocation9 + $0x84] ss:$8 sps:$4 sm:$0xff]   ;;  %v1408_v42 = vld [vmem:[#allocation9 + $0x80] ss:$8 sps:$4 sm:$0xff]   ;;  %v1409_v43 = vld [vmem:[#allocation9 + $0x94] ss:$8 sps:$4 sm:$0xff]  }
  0x7e   :  { %339 = vperm.xlu1 %1338, %v288_v5   ;;  %837 = vmatpush1.bf16.msra.mxu1 %v1363_v25  ;;  %v1414_v44 = vld [vmem:[#allocation9 + $0x90] ss:$8 sps:$4 sm:$0xff]   ;;  %v1415_v45 = vld [vmem:[#allocation9 + $0xa4] ss:$8 sps:$4 sm:$0xff]   ;;  %v1420_v46 = vld [vmem:[#allocation9 + $0xa0] ss:$8 sps:$4 sm:$0xff]  }
  0x7f   :  { %1339 = vset.pattern.permute.xlu0 %v1654_v17  ;;  %838 = vmatprep.subr.bf16.mxu1 %v1364_v26  ;;  %v1421_v47 = vld [vmem:[#allocation9 + $0xb4] ss:$8 sps:$4 sm:$0xff]   ;;  %v1426_v48 = vld [vmem:[#allocation9 + $0xb0] ss:$8 sps:$4 sm:$0xff]   ;;  %v1427_v49 = vld [vmem:[#allocation9 + $0xc4] ss:$8 sps:$4 sm:$0xff]  }
  0x80   :  { %349 = vperm.xlu0 %1339, %v288_v5   ;;  %246 = vmatpush1.bf16.msra.mxu0 %v1352_v15  ;;  %v1432_v50 = vld [vmem:[#allocation9 + $0xc0] ss:$8 sps:$4 sm:$0xff]   ;;  %v1433_v51 = vld [vmem:[#allocation9 + $0xd4] ss:$8 sps:$4 sm:$0xff]   ;;  %v1438_v52 = vld [vmem:[#allocation9 + $0xd0] ss:$8 sps:$4 sm:$0xff]  }
  0x81   :  { %475 = vmatprep.subr.bf16.mxu0 %v1357_v20  ;;  %v1439_v53 = vld [vmem:[#allocation9 + $0xe4] ss:$8 sps:$4 sm:$0xff]   ;;  %v1444_v54 = vld [vmem:[#allocation9 + $0xe0] ss:$8 sps:$4 sm:$0xff]   ;;  %v1445_v55 = vld [vmem:[#allocation9 + $0xf4] ss:$8 sps:$4 sm:$0xff]  }
  0x82   :  { %1340 = vset.pattern.permute.xlu1 %v1655_v18  ;;  %839 = vmatpush1.bf16.msra.mxu1 %v1366_v28  ;;  %v1450_v56 = vld [vmem:[#allocation9 + $0xf0] ss:$8 sps:$4 sm:$0xff]   ;;  %v1834_v58 = vshrl.u32 %v138_v57, 7  ;;  %v1194_v4 = vld [vmem:[%s1899_s5] ss:$0 sm:$0xff]  ;;  %vm1658_vm1 = vmmov 0  }
  0x83   :  { %359 = vperm.xlu1 %1340, %v288_v5   ;;  %1193 = vmatmul.mubr.msk.bf16.vlgmr.msra.gmra.mrb[4].mxu0 %vm198_vm0, %v127_v11  ;;  %v1423_v57 = vld [vmem:[#allocation9 + $0x190] ss:$8 sps:$4 sm:$0xff]   ;;  %s1659_s18 = smov [#allocation14]   ;;  %vm1164_vm2 = vcmask 57344  }
  0x84   :  { %1342 = vset.pattern.permute.xlu0 %v1650_v2  ;;  %507 = vmatprep.mubr.bf16.mxu0 %v1650_v2  ;;  %v1837_v59 = vsub.s32 0, %v1834_v58  ;;  %v148_v62 = vsub.s32 2, %v1834_v58  ;;  %v1845_v0 = vsub.s32 1, %v1834_v58  ;;  %v152_v3 = vsub.s32 3, %v1834_v58  ;;  %s1172_s2 = sshll.u32 %s1659_s18, 4  ;;  %s1173_s2 = int_to_ptr.vmem [resolvable:$true] %s1172_s2 }
  0x85   :  { %476 = vmatpush1.bf16.msra.mxu0 %v1355_v21  ;;  %840 = vmatprep.subr.bf16.mxu1 %v1367_v29  ;;  %v344_v7 = vsub.s32 4, %v1834_v58  ;;  %v354_v11 = vsub.s32 5, %v1834_v58  ;;  %v364_v16 = vsub.s32 6, %v1834_v58  ;;  %v374_v25 = vsub.s32 7, %v1834_v58  ;;  %v1460_v58 = vld [vmem:[#allocation12 + $0x8] sm:$0xff]   ;;  %s1609_s20 = scalar_lea.vmem %s1173_s2, 32  ;;  %p1610_p7 = scmp.lt.s32.totalorder %s1173_s2, %s1173_s2 }
  0x86   :  { %477 = vmatprep.subr.bf16.mxu0 %v1360_v23  ;;  %841 = vmatpush1.bf16.msra.mxu1 %v1372_v30  ;;  %v299_v61 = vrot.slane %v289_v60, %v1837_v59  ;;  %v315_v6 = vrot.slane %v289_v60, %v1845_v0  ;;  %v335_v10 = vrot.slane %v289_v60, %v152_v3 }
  0x87   :  { %1341 = vset.pattern.permute.xlu1 %v1656_v19  ;;  %842 = vmatprep.subr.bf16.mxu1 %v1373_v31  ;;  %v345_v15 = vrot.slane %v289_v60, %v344_v7  ;;  %v355_v20 = vrot.slane %v289_v60, %v354_v11  ;;  %v365_v23 = vrot.slane %v289_v60, %v364_v16  ;;  %v1453_v7 = vld [vmem:[#allocation9 + $0x1e4] ss:$8 sps:$4 sm:$0xff]   ;;  %v1454_v11 = vld [vmem:[#allocation9 + $0x1f0] ss:$8 sps:$4 sm:$0xff]  }
  0x88   :  { %369 = vperm.xlu1 %1341, %v288_v5   ;;  %v325_v5 = vrot.slane %v289_v60, %v148_v62  ;;  %v375_v31 = vrot.slane %v289_v60, %v374_v25  ;;  %v1431_v60 = vld [vmem:[#allocation9 + $0x1a4] ss:$8 sps:$4 sm:$0xff]  }
  0x89   :  { %478 = vmatpush1.bf16.msra.mxu0 %v1358_v22 }
  0x8a   :  { %877 = vmatprep.subr.bf16.mxu0 %v1371_v27  ;;  %843 = vmatpush1.bf16.msra.mxu1 %v1378_v32 }
  0x8b   :  { %844 = vmatprep.subr.bf16.mxu1 %v1379_v33 }
  0x8e   :  { %845 = vmatpush1.bf16.msra.mxu1 %v1384_v34 }
  0x8f   :  { %846 = vmatprep.subr.bf16.mxu1 %v1385_v35 }
  0x92   :  { %847 = vmatpush1.bf16.msra.mxu1 %v1390_v36 }
  0x93   :  { %848 = vmatprep.subr.bf16.mxu1 %v1391_v37 }
  0x96   :  { %849 = vmatpush1.bf16.msra.mxu1 %v1396_v38  ;;  %v1369_v38 = vld [vmem:[#allocation9 + $0x100] ss:$8 sps:$4 sm:$0xff]  }
  0x97   :  { %850 = vmatprep.subr.bf16.mxu1 %v1397_v39 }
  0x9a   :  { %851 = vmatpush1.bf16.msra.mxu1 %v1402_v40  ;;  %v1377_v40 = vld [vmem:[#allocation9 + $0x114] ss:$8 sps:$4 sm:$0xff]  }
  0x9b   :  { %852 = vmatprep.subr.bf16.mxu1 %v1403_v41  ;;  %v1375_v41 = vld [vmem:[#allocation9 + $0x110] ss:$8 sps:$4 sm:$0xff]  }
  0x9e   :  { %853 = vmatpush1.bf16.msra.mxu1 %v1408_v42  ;;  %v1383_v42 = vld [vmem:[#allocation9 + $0x124] ss:$8 sps:$4 sm:$0xff]  }
  0x9f   :  { %854 = vmatprep.subr.bf16.mxu1 %v1409_v43  ;;  %v1381_v43 = vld [vmem:[#allocation9 + $0x120] ss:$8 sps:$4 sm:$0xff]  }
  0xa2   :  { %855 = vmatpush1.bf16.msra.mxu1 %v1414_v44  ;;  %v1389_v44 = vld [vmem:[#allocation9 + $0x134] ss:$8 sps:$4 sm:$0xff]  }
  0xa3   :  { %856 = vmatprep.subr.bf16.mxu1 %v1415_v45  ;;  %v1387_v45 = vld [vmem:[#allocation9 + $0x130] ss:$8 sps:$4 sm:$0xff]  }
  0xa6   :  { %857 = vmatpush1.bf16.msra.mxu1 %v1420_v46  ;;  %v1395_v46 = vld [vmem:[#allocation9 + $0x144] ss:$8 sps:$4 sm:$0xff]  }
  0xa7   :  { %858 = vmatprep.subr.bf16.mxu1 %v1421_v47  ;;  %v1393_v47 = vld [vmem:[#allocation9 + $0x140] ss:$8 sps:$4 sm:$0xff]  }
  0xaa   :  { %859 = vmatpush1.bf16.msra.mxu1 %v1426_v48  ;;  %v1401_v48 = vld [vmem:[#allocation9 + $0x154] ss:$8 sps:$4 sm:$0xff]  }
  0xab   :  { %860 = vmatprep.subr.bf16.mxu1 %v1427_v49  ;;  %v1399_v49 = vld [vmem:[#allocation9 + $0x150] ss:$8 sps:$4 sm:$0xff]  }
  0xae   :  { %861 = vmatpush1.bf16.msra.mxu1 %v1432_v50  ;;  %v1407_v50 = vld [vmem:[#allocation9 + $0x164] ss:$8 sps:$4 sm:$0xff]  }
  0xaf   :  { %862 = vmatprep.subr.bf16.mxu1 %v1433_v51  ;;  %v1405_v51 = vld [vmem:[#allocation9 + $0x160] ss:$8 sps:$4 sm:$0xff]  }
  0xb2   :  { %863 = vmatpush1.bf16.msra.mxu1 %v1438_v52  ;;  %v1413_v52 = vld [vmem:[#allocation9 + $0x174] ss:$8 sps:$4 sm:$0xff]  }
  0xb3   :  { %864 = vmatprep.subr.bf16.mxu1 %v1439_v53  ;;  %v1411_v53 = vld [vmem:[#allocation9 + $0x170] ss:$8 sps:$4 sm:$0xff]  }
  0xb6   :  { %865 = vmatpush1.bf16.msra.mxu1 %v1444_v54  ;;  %v1419_v54 = vld [vmem:[#allocation9 + $0x184] ss:$8 sps:$4 sm:$0xff]  }
  0xb7   :  { %866 = vmatprep.subr.bf16.mxu1 %v1445_v55  ;;  %v1417_v55 = vld [vmem:[#allocation9 + $0x180] ss:$8 sps:$4 sm:$0xff]  }
  0xba   :  { %867 = vmatpush1.bf16.msra.mxu1 %v1450_v56  ;;  %v1425_v56 = vld [vmem:[#allocation9 + $0x194] ss:$8 sps:$4 sm:$0xff]  }
  0xf3   :  { %v320_v63 = vpop.permute.xlu1 %319 }
  0xf4   :  { %v294_v1 = vpop.permute.xlu0 %293  ;;  %v326_v13 = vmul.f32 %v325_v5, %v320_v63  ;;  %v1437_v63 = vld [vmem:[#allocation9 + $0x1b4] ss:$8 sps:$4 sm:$0xff]  }
  0xf5   :  { %v300_v2 = vmul.f32 %v299_v61, %v294_v1  ;;  %v1429_v61 = vld [vmem:[#allocation9 + $0x1a0] ss:$8 sps:$4 sm:$0xff]   ;;  %v1435_v1 = vld [vmem:[#allocation9 + $0x1b0] ss:$8 sps:$4 sm:$0xff]   ;;  %v1449_v5 = vld [vmem:[#allocation9 + $0x1d4] ss:$8 sps:$4 sm:$0xff]  }
  0xf7   :  { %v307_v9 = vadd.f32 %v1194_v4, %v300_v2  ;;  %v1443_v2 = vld [vmem:[#allocation9 + $0x1c4] ss:$8 sps:$4 sm:$0xff]   ;;  %v1441_v4 = vld [vmem:[#allocation9 + $0x1c0] ss:$8 sps:$4 sm:$0xff]  }
  0xf8   :  { %v330_v8 = vpop.permute.xlu1 %329 }
  0xf9   :  { %v336_v17 = vmul.f32 %v335_v10, %v330_v8  ;;  %v1451_v8 = vld [vmem:[#allocation9 + $0x1e0] ss:$8 sps:$4 sm:$0xff]   ;;  %v136_v10 = vld [vmem:[%s1897_s3] sm:$0xf] }
  0xfa   :  { %v310_v12 = vpop.permute.xlu0 %309 }
  0xfb   :  { %v316_v14 = vmul.f32 %v315_v6, %v310_v12  ;;  %v1447_v6 = vld [vmem:[#allocation9 + $0x1d0] ss:$8 sps:$4 sm:$0xff]   ;;  %v141_v12 = vrot.slane %v136_v10, %v1837_v59 }
  0xfd   :  { %v317_v18 = vadd.f32 %v316_v14, %v307_v9  ;;  %v340_v19 = vpop.permute.xlu1 %339  ;;  %v1456_v9 = vld [vmem:[#allocation9 + $0x1f4] ss:$8 sps:$4 sm:$0xff]  }
  0xfe   :  { %v346_v22 = vmul.f32 %v345_v15, %v340_v19 }
  0xff   :  { %v327_v21 = vadd.f32 %v326_v13, %v317_v18  ;;  %v350_v24 = vpop.permute.xlu0 %349  ;;  %v145_v13 = vrot.slane %v136_v10, %v1845_v0 }
 0x100   :  { %v356_v27 = vmul.f32 %v355_v20, %v350_v24  ;;  %v153_v24 = vrot.slane %v136_v10, %v152_v3  ;;  %v1461_v3 = vld [vmem:[#allocation12 + $0x50] sm:$0xff]  }
 0x101   :  { %v337_v26 = vadd.f32 %v336_v17, %v327_v21 }
 0x102   :  { %v360_v28 = vpop.permute.xlu1 %359 }
 0x103   :  { %v347_v29 = vadd.f32 %v346_v22, %v337_v26  ;;  %v366_v30 = vmul.f32 %v365_v23, %v360_v28  ;;  %v149_v22 = vrot.slane %v136_v10, %v148_v62  ;;  %v1457_v62 = vld [vmem:[#allocation12 + $0x40] sm:$0xff]  }
 0x104   :  { %1281 = vmatprep.subr.bf16.mxu1 %v1457_v62 }
 0x105   :  { %v357_v32 = vadd.f32 %v356_v27, %v347_v29 }
 0x107   :  { %v370_v33 = vpop.permute.xlu1 %369  ;;  %v367_v34 = vadd.f32 %v366_v30, %v357_v32 }
 0x108   :  { %v376_v35 = vmul.f32 %v375_v31, %v370_v33 }
 0x10a   :  { %v377_v36 = vadd.f32 %v376_v35, %v367_v34 }
 0x10c   :  { %v378_v37 = vmax.f32 %v377_v36, 0.0  ;;  %v1458_v36 = vld [vmem:[#allocation12] sm:$0xff]  }
 0x10e   :  { %v447_v39 = vpack.c.bf16 %v378_v37, %v378_v37  ;;  %v1459_v37 = vld [vmem:[#allocation12 + $0x48] sm:$0xff]  }
 0x110   :  { %1199 = vmatmul.mubr.msk.bf16.vlgmr.msra.gmra.mrb[8].mxu0 %vm198_vm0, %v447_v39  ;;  %v1463_v39 = vld [vmem:[#allocation12 + $0x58] sm:$0xff]  }
 0x111   :  { %878 = vmatpush1.bf16.msra.mxu0 %v1369_v38  ;;  %v1462_v38 = vld [vmem:[#allocation12 + $0x10] sm:$0xff]  }
 0x112   :  { %879 = vmatprep.subr.bf16.mxu0 %v1377_v40  ;;  %v1464_v40 = vld [vmem:[#allocation12 + $0x18] sm:$0xff]  }
 0x115   :  { %880 = vmatpush1.bf16.msra.mxu0 %v1375_v41  ;;  %v1465_v41 = vld [vmem:[#allocation12 + $0x60] sm:$0xff]  }
 0x116   :  { %881 = vmatprep.subr.bf16.mxu0 %v1383_v42  ;;  %v1466_v42 = vld [vmem:[#allocation12 + $0x20] sm:$0xff]  }
 0x119   :  { %882 = vmatpush1.bf16.msra.mxu0 %v1381_v43  ;;  %v1467_v43 = vld [vmem:[#allocation12 + $0x68] sm:$0xff]  }
 0x11a   :  { %883 = vmatprep.subr.bf16.mxu0 %v1389_v44  ;;  %v1468_v44 = vld [vmem:[#allocation12 + $0x28] sm:$0xff]  }
 0x11d   :  { %884 = vmatpush1.bf16.msra.mxu0 %v1387_v45  ;;  %v1469_v45 = vld [vmem:[#allocation12 + $0x70] sm:$0xff]  }
 0x11e   :  { %885 = vmatprep.subr.bf16.mxu0 %v1395_v46  ;;  %v1470_v46 = vld [vmem:[#allocation12 + $0x30] sm:$0xff]  }
 0x121   :  { %886 = vmatpush1.bf16.msra.mxu0 %v1393_v47  ;;  %v1471_v47 = vld [vmem:[#allocation12 + $0x78] sm:$0xff]  }
 0x122   :  { %887 = vmatprep.subr.bf16.mxu0 %v1401_v48  ;;  %v1472_v48 = vld [vmem:[#allocation12 + $0x38] sm:$0xff]  }
 0x125   :  { %888 = vmatpush1.bf16.msra.mxu0 %v1399_v49 }
 0x126   :  { %889 = vmatprep.subr.bf16.mxu0 %v1407_v50 }
 0x129   :  { %890 = vmatpush1.bf16.msra.mxu0 %v1405_v51 }
 0x12a   :  { %891 = vmatprep.subr.bf16.mxu0 %v1413_v52 }
 0x12d   :  { %892 = vmatpush1.bf16.msra.mxu0 %v1411_v53 }
 0x12e   :  { %893 = vmatprep.subr.bf16.mxu0 %v1419_v54 }
 0x131   :  { %894 = vmatpush1.bf16.msra.mxu0 %v1417_v55 }
 0x132   :  { %895 = vmatprep.subr.bf16.mxu0 %v1425_v56 }
 0x135   :  { %896 = vmatpush1.bf16.msra.mxu0 %v1423_v57 }
 0x136   :  { %897 = vmatprep.subr.bf16.mxu0 %v1431_v60 }
 0x139   :  { %898 = vmatpush1.bf16.msra.mxu0 %v1429_v61  ;;  %v918_v61 = vld [vmem:[%s1902_s8] sm:$0x3] }
 0x13a   :  { %899 = vmatprep.subr.bf16.mxu0 %v1437_v63  ;;  %v923_v63 = vrot.slane %v918_v61, %v1837_v59 }
 0x13d   :  { %900 = vmatpush1.bf16.msra.mxu0 %v1435_v1 }
 0x13e   :  { %901 = vmatprep.subr.bf16.mxu0 %v1443_v2  ;;  %v927_v2 = vrot.slane %v918_v61, %v1845_v0 }
 0x141   :  { %902 = vmatpush1.bf16.msra.mxu0 %v1441_v4 }
 0x142   :  { %903 = vmatprep.subr.bf16.mxu0 %v1449_v5 }
 0x145   :  { %904 = vmatpush1.bf16.msra.mxu0 %v1447_v6 }
 0x146   :  { %905 = vmatprep.subr.bf16.mxu0 %v1453_v7 }
 0x149   :  { %906 = vmatpush1.bf16.msra.mxu0 %v1451_v8 }
 0x14a   :  { %907 = vmatprep.subr.bf16.mxu0 %v1456_v9 }
 0x14d   :  { %908 = vmatpush1.bf16.msra.mxu0 %v1454_v11 }
 0x14e   :  { %v236_v14 = vpop.f32.mrb[0].mxu0 }
 0x14f   :  { %v237_v15 = vadd.f32 %v236_v14, %v141_v12  ;;  %v238_v16 = vpop.f32.mrb[1].mxu0 }
 0x150   :  { %v239_v17 = vadd.f32 %v238_v16, %v145_v13  ;;  %v240_v18 = vpop.f32.mrb[2].mxu0  ;;  %v1114_v16 = vld [vmem:[#allocation2] sm:$0x1] }
 0x151   :  { %v284_v19 = vmax.f32 %v237_v15, 0.0  ;;  %v241_v20 = vpop.f32.mrb[3].mxu0  ;;  %v1657_v15 = vmov 0.0   ;;  %1117 = vperm.xlu0 %1342, %v1114_v16  }
 0x152   :  { %v285_v21 = vmax.f32 %v239_v17, 0.0  ;;  %1305 = vmatprep.subr.bf16.mxu0 %v1657_v15  ;;  %v1264_v17 = vld [vmem:[%s1904_s10] ss:$0 sm:$0xff]  ;;  %s1605_s10 = scalar_lea.vmem %s1173_s2, 16 }
 0x153   :  { %v379_v25 = vpack.c.bf16 %v284_v19, %v284_v19  ;;  %p1606_p6 = scmp.ne.s32.totalorder %s1173_s2, %s1605_s10  ;;  %p1611_p8 = scmp.lt.s32.totalorder %s1609_s20, %s1605_s10 }
 0x154   :  { %v380_v23 = vpack.c.bf16 %v285_v21, %v285_v21 }
 0x155   :  { %p1612_p9 = por %p1611_p8, %p1610_p7 }
 0x156   :  { %v277_v26 = vpop.f32.mrb[4].mxu0  ;;  %868 = vmatprep.mubr.bf16.mxu1 %v380_v23 }
 0x157   :  { %v278_v27 = vadd.f32 %v277_v26, %v149_v22  ;;  %v279_v28 = vpop.f32.mrb[5].mxu0  ;;  %869 = vmatmul.mubr.bf16.vlgmr.msra.gmra.mrb[0].mxu1 %v379_v25  ;;  %v1112_v25 = vld [vmem:[%s1905_s11] sm:$0x1]  ;;  %p1613_p10 = pnand %p1612_p9, %p1606_p6 }
 0x158   :  { %v280_v29 = vadd.f32 %v279_v28, %v153_v24  ;;  %v281_v30 = vpop.f32.mrb[6].mxu0  ;;  %1282 = vmatpush3.bf16.msra.mxu1 %v1458_v36 }
 0x159   :  { %v286_v31 = vmax.f32 %v278_v27, 0.0  ;;  %v282_v32 = vpop.f32.mrb[7].mxu0  ;;  %1283 = vmatprep.subr.bf16.mxu1 %v1459_v37 }
 0x15a   :  { %v287_v33 = vmax.f32 %v280_v29, 0.0 }
 0x15b   :  { %v381_v35 = vpack.c.bf16 %v286_v31, %v286_v31 }
 0x15c   :  { %v382_v34 = vpack.c.bf16 %v287_v33, %v287_v33  ;;  %1284 = vmatpush3.bf16.msra.mxu1 %v1460_v58 }
 0x15d   :  { %1285 = vmatprep.subr.bf16.mxu1 %v1461_v3 }
 0x15e   :  { %909 = vmatprep.mubr.bf16.mxu0 %v382_v34 }
 0x15f   :  { %910 = vmatmul.mubr.bf16.vlgmr.msra.gmra.mrb[12].mxu0 %v381_v35 }
 0x160   :  { %1286 = vmatpush3.bf16.msra.mxu1 %v1462_v38  ;;  %1307 = vmatprep.mubr.msk.bf16.mxu0 %vm1658_vm1, %v1657_v15 }
 0x161   :  { %1287 = vmatprep.subr.bf16.mxu1 %v1463_v39 }
 0x164   :  { %1288 = vmatpush3.bf16.msra.mxu1 %v1464_v40 }
 0x165   :  { %1289 = vmatprep.subr.bf16.mxu1 %v1465_v41 }
 0x168   :  { %1290 = vmatpush3.bf16.msra.mxu1 %v1466_v42 }
 0x169   :  { %1291 = vmatprep.subr.bf16.mxu1 %v1467_v43 }
 0x16c   :  { %1292 = vmatpush3.bf16.msra.mxu1 %v1468_v44 }
 0x16d   :  { %1293 = vmatprep.subr.bf16.mxu1 %v1469_v45 }
 0x170   :  { %1294 = vmatpush3.bf16.msra.mxu1 %v1470_v46 }
 0x171   :  { %1295 = vmatprep.subr.bf16.mxu1 %v1471_v47 }
 0x174   :  { %1296 = vmatpush3.bf16.msra.mxu1 %v1472_v48 }
 0x1d0   :  { %v1118_v26 = vpop.permute.xlu0 %1117 }
 0x1d1   :  { %v1123_v27 = vrot.slane %v1118_v26, %v1837_v59 }
 0x1e3   :  { %v509_v49 = vpop.f32.mrb[8].mxu0 }
 0x1e4   :  { %v511_v50 = vpop.f32.mrb[9].mxu0 }
 0x1e5   :  { %v513_v51 = vpop.f32.mrb[10].mxu0 }
 0x1e6   :  { %v514_v52 = vpop.f32.mrb[11].mxu0 }
 0x22a   :  { %v870_v53 = vpop.f32.mrb[0].mxu1 }
 0x22b   :  { %v871_v54 = vadd.f32 %v870_v53, %v509_v49  ;;  %v872_v55 = vpop.f32.mrb[1].mxu1 }
 0x22c   :  { %v873_v56 = vadd.f32 %v872_v55, %v511_v50  ;;  %v874_v57 = vpop.f32.mrb[2].mxu1 }
 0x22d   :  { %v875_v60 = vpop.f32.mrb[3].mxu1 }
 0x232   :  { %v911_v1 = vpop.f32.mrb[12].mxu0 }
 0x233   :  { %v912_v4 = vadd.f32 %v911_v1, %v871_v54  ;;  %v913_v5 = vpop.f32.mrb[13].mxu0 }
 0x234   :  { %v914_v6 = vadd.f32 %v913_v5, %v873_v56  ;;  %v915_v7 = vpop.f32.mrb[14].mxu0 }
 0x235   :  { %v930_v8 = vadd.f32 %v923_v63, %v912_v4  ;;  %v916_v9 = vpop.f32.mrb[15].mxu0 }
 0x236   :  { %v931_v10 = vadd.f32 %v927_v2, %v914_v6 }
 0x237   :  { %v932_v11 = vmax.f32 %v930_v8, 0.0 }
 0x238   :  { %v933_v12 = vmax.f32 %v931_v10, 0.0 }
 0x239   :  { %v934_v14 = vpack.c.bf16 %v932_v11, %v932_v11 }
 0x23a   :  { %v935_v13 = vpack.c.bf16 %v933_v12, %v933_v12 }
 0x23c   :  { %1103 = vmatprep.mubr.bf16.mxu1 %v935_v13 }
 0x23d   :  { %1104 = vmatmul.mubr.bf16.vlgmr.msra.gmra.mrb[4].mxu1 %v934_v14 }
 0x310   :  { %v1297_v0 = vpop.f32.mrb[4].mxu1 }
 0x311   :  { %v1298_v18 = vpop.f32.mrb[5].mxu1 }
 0x312   :  { %v1299_v19 = vadd.f32 %v1298_v18, %v1297_v0  ;;  %v1300_v20 = vpop.f32.mrb[6].mxu1 }
 0x313   :  { %v1301_v21 = vpop.f32.mrb[7].mxu1 }
 0x314   :  { %v1106_v22 = vadd.f32 %v1299_v19, %v1264_v17 }
 0x316   :  { %v1111_v23 = vmax.f32 %v1106_v22, 0.0 }
 0x318   :  { %v1113_v24 = vpack.c.bf16 %v1111_v23, %v1111_v23 }
 0x31a   :  { %1306 = vmatpush3.bf16.xpose.msra.mxu0 %v1113_v24 }
 0x321   :  { %1308 = vmatmul.mubr.bf16.vlgmr.msra.gmra.mrb[16].mxu0 %v1112_v25 }
 0x3f4   :  { %v1158_v28 = vpop.f32.mrb[16].mxu0 }
 0x3f5   :  { %v1159_v29 = vadd.f32 %v1158_v28, %v1123_v27  ;;  %v1309_v30 = vpop.f32.mrb[17].mxu0 }
 0x3f6   :  { %v1161_v31 = vpop.f32.mrb[18].mxu0 }
 0x3f7   :  { %v1310_v32 = vpop.f32.mrb[19].mxu0  ;;  %1165 = vst.msk [vmem:[#allocation14] sm:$0x1] %vm1164_vm2, %v1159_v29 }
 0x3f8   :  { %1616 = shalt.err (!%p1613_p10)
}
 0x3f9   :  { %s1617_s21 = scalar_lea.hbm %s1907_s13, 16 }
 0x3fa   :  { %p1618_p11 = scmp.ne.s32.totalorder %s1907_s13, %s1617_s21  ;;  %p1621_p12 = scmp.lt.u32.totalorder %s1617_s21, %s1907_s13 }
 0x3fc   :  { %p1623_p13 = pnand %p1621_p12, %p1618_p11 }
 0x3fe   :  { %1626 = shalt.err (!%p1623_p13)
}
 0x3ff   :  { %1175 = dma.vmem_to_hbm [thread:$0]  %s1173_s2, 16, %s1907_s13, [#allocation5]  }
 0x400   :  { %1635 = dma.done.wait [#allocation5], 16  }
 0x401   :  { %1636 = vsyncadd [#allocation5], 4294967280 }
 0x402   :  { %1179 = vsyncpa [#allocation4], 1 }
 0x403   :  { %1180 = vsyncpa [#allocation7], 1 }
 0x404   :  { %1181 = vsyncpa [#allocation10], 1 }
 0x405   :  { %1182 = vsyncpa [#allocation13], 1 }
 0x406   :  { %1183 = vsyncpa [#allocation5], 1 }

</bundles_post_ra>
